<compile_context>
chip_gen: v7x
topology: tpu7x:2x2x1
jax: 0.10.0
libtpu: 0.0.40
codegen_flags: <defaults>
</compile_context>

<pallas_src>
import jax
import jax.numpy as jnp
from jax.experimental import pallas as pl
from jax.experimental.pallas import tpu as pltpu


_TILE_VMEM_BUDGET = 24 << 20   # target double-buffered working set (all gens)
_VMEM_LIMIT_BYTES = 48 << 20   # scoped VMEM limit; safely under v7x 64 MiB phys


def _feq_kernel(uax_ref, uay_ref, rho_ref, ux_ref, uy_ref, t_ref, feq_ref):
    # uax_ref / uay_ref : SMEM (1,) scalars
    # rho/ux/uy/t refs  : VMEM (th, W) tiles
    # feq_ref           : VMEM (9, th, W) output tile
    uax = uax_ref[0]
    uay = uay_ref[0]

    rho = rho_ref[...]
    T = t_ref[...]
    ux_diff = ux_ref[...] - uax
    uy_diff = uy_ref[...] - uay

    # Hoisted shared subexpressions: sx = ux_diff^2 + T, sy = uy_diff^2 + T
    sx = ux_diff * ux_diff + T
    sy = uy_diff * uy_diff + T

    # Phi terms (exactly matching _compute_phi)
    mx = (sx - ux_diff) * 0.5
    zx = 1.0 - sx
    px = (sx + ux_diff) * 0.5
    my = (sy - uy_diff) * 0.5
    zy = 1.0 - sy
    py = (sy + uy_diff) * 0.5

    # Each of rho*px / rho*zx / rho*mx is reused 3x in _compute_feq_core.
    r_px = rho * px
    r_zx = rho * zx
    r_mx = rho * mx

    feq_ref[0] = r_px * zy
    feq_ref[1] = r_zx * py
    feq_ref[2] = r_mx * zy
    feq_ref[3] = r_zx * my
    feq_ref[4] = r_px * py
    feq_ref[5] = r_mx * py
    feq_ref[6] = r_mx * my
    feq_ref[7] = r_px * my
    feq_ref[8] = r_zx * zy


def _pick_row_tile(H, W, tile_budget_bytes):
    """Pick (th, padded_H): full-width row tiles sized to the VMEM budget."""
    # Per tile row: (4 input + 9 output) f32 planes, double-buffered.
    bytes_per_row = 13 * 2 * 4 * W
    max_rows = max(8, tile_budget_bytes // bytes_per_row)
    if H <= max_rows:
        # Single full-height tile; block dims equal the array dims -> always legal.
        return H, H
    th = int(min(max_rows, 512))          # >512 rows gains nothing more
    th = max(8, (th // 8) * 8)            # keep the sublane-dim multiple of 8
    Hp = ((H + th - 1) // th) * th        # pad rows so the grid is exact
    return th, Hp


def f_pop_feq(rho, ux, Uax, uy, Uay, T, *, tile_budget_bytes=_TILE_VMEM_BUDGET):
    """Dense forward of F_pop_torch: returns Feq of shape (9, H, W) float32."""
    H, W = T.shape
    th, Hp = _pick_row_tile(H, W, tile_budget_bytes)

    rho = rho.astype(jnp.float32)
    ux = ux.astype(jnp.float32)
    uy = uy.astype(jnp.float32)
    T = T.astype(jnp.float32)

    if Hp != H:
        pad = ((0, Hp - H), (0, 0))
        rho = jnp.pad(rho, pad)
        ux = jnp.pad(ux, pad)
        uy = jnp.pad(uy, pad)
        T = jnp.pad(T, pad)

    uax_arr = jnp.asarray(Uax, jnp.float32).reshape((1,))
    uay_arr = jnp.asarray(Uay, jnp.float32).reshape((1,))

    field_spec = pl.BlockSpec((th, W), lambda i: (i, 0))
    smem_spec = pl.BlockSpec(memory_space=pltpu.SMEM)

    feq = pl.pallas_call(
        _feq_kernel,
        out_shape=jax.ShapeDtypeStruct((9, Hp, W), jnp.float32),
        grid=(Hp // th,),
        in_specs=[
            smem_spec,   # Uax
            smem_spec,   # Uay
            field_spec,  # rho
            field_spec,  # ux
            field_spec,  # uy
            field_spec,  # T
        ],
        out_specs=pl.BlockSpec((9, th, W), lambda i: (0, i, 0)),
        compiler_params=pltpu.CompilerParams(
            dimension_semantics=("parallel",),
            vmem_limit_bytes=_VMEM_LIMIT_BYTES,
        ),
    )(uax_arr, uay_arr, rho, ux, uy, T)

    if Hp != H:
        feq = feq[:, :H, :]
    return feq


def _feq_reference(rho, ux, Uax, uy, Uay, T):
    """Pure-JAX reference mirroring the PyTorch module (for verification)."""
    ux_diff = ux - Uax
    uy_diff = uy - Uay
    ux2 = ux_diff ** 2
    uy2 = uy_diff ** 2
    mx = (-ux_diff + ux2 + T) * 0.5
    my = (-uy_diff + uy2 + T) * 0.5
    zx = 1 - (ux2 + T)
    zy = 1 - (uy2 + T)
    px = (ux_diff + ux2 + T) * 0.5
    py = (uy_diff + uy2 + T) * 0.5
    return jnp.stack([
        rho * px * zy,
        rho * zx * py,
        rho * mx * zy,
        rho * zx * my,
        rho * px * py,
        rho * mx * py,
        rho * mx * my,
        rho * px * my,
        rho * zx * zy,
    ], axis=0)


def _make_inputs(key, H, W):
    k1, k2, k3, k4 = jax.random.split(key, 4)
    rho = 1.0 + 0.05 * jax.random.normal(k1, (H, W), jnp.float32)
    ux = 0.1 * jax.random.normal(k2, (H, W), jnp.float32)
    uy = 0.1 * jax.random.normal(k3, (H, W), jnp.float32)
    T = jnp.full((H, W), 1.0 / 3.0, jnp.float32) \
        + 0.01 * jax.random.normal(k4, (H, W), jnp.float32)
    return rho, ux, uy, T


if __name__ == "__main__":
    key = jax.random.PRNGKey(0)

    # Case 1: small grid, single full-height tile (default adaptive tiling).
    H1, W1 = 48, 160
    rho, ux, uy, T = _make_inputs(key, H1, W1)
    Uax = jnp.float32(0.02)
    Uay = jnp.float32(-0.01)

    feq1 = jax.block_until_ready(f_pop_feq(rho, ux, Uax, uy, Uay, T))
    ref1 = _feq_reference(rho, ux, Uax, uy, Uay, T)
    assert feq1.shape == (9, H1, W1)
    assert jnp.allclose(feq1, ref1, atol=1e-5, rtol=1e-5)

    # Case 2: force the multi-step, row-padded path (H not a multiple of the
    # tile) by shrinking the tile budget — exercises grid > 1 + padding/slice.
    H2, W2 = 52, 160
    rho2, ux2, uy2, T2 = _make_inputs(jax.random.PRNGKey(1), H2, W2)
    feq2 = jax.block_until_ready(
        f_pop_feq(rho2, ux2, Uax, uy2, Uay, T2, tile_budget_bytes=256 << 10))
    ref2 = _feq_reference(rho2, ux2, Uax, uy2, Uay, T2)
    assert feq2.shape == (9, H2, W2)
    assert jnp.allclose(feq2, ref2, atol=1e-5, rtol=1e-5)

    print("KERNEL_OK")
</pallas_src>

<mosaic_0001>
module attributes {stable_mosaic.version = 11 : i64} {
  func.func @_feq_kernel(%arg0: i32, %arg1: memref<1xf32, #tpu.memory_space<smem>>, %arg2: memref<1xf32, #tpu.memory_space<smem>>, %arg3: memref<48x160xf32, #tpu.memory_space<vmem>>, %arg4: memref<48x160xf32, #tpu.memory_space<vmem>>, %arg5: memref<48x160xf32, #tpu.memory_space<vmem>>, %arg6: memref<48x160xf32, #tpu.memory_space<vmem>>, %arg7: memref<9x48x160xf32, #tpu.memory_space<vmem>>) attributes {dimension_semantics = [#tpu.dimension_semantics<parallel>], iteration_bounds = array<i64: 1>, scalar_prefetch = 0 : i64, scratch_operands = 0 : i64, tpu.core_type = #tpu.core_type<tc>, window_params = [{transform_indices = @transform_0, window_bounds = array<i64: 1>}, {transform_indices = @transform_1, window_bounds = array<i64: 1>}, {transform_indices = @transform_2, window_bounds = array<i64: 48, 160>}, {transform_indices = @transform_3, window_bounds = array<i64: 48, 160>}, {transform_indices = @transform_4, window_bounds = array<i64: 48, 160>}, {transform_indices = @transform_5, window_bounds = array<i64: 48, 160>}, {transform_indices = @transform_6, window_bounds = array<i64: 9, 48, 160>}]} {
    %c0 = arith.constant 0 : index
    %0 = memref.load %arg1[%c0] : memref<1xf32, #tpu.memory_space<smem>>
    %c0_0 = arith.constant 0 : index
    %1 = memref.load %arg2[%c0_0] : memref<1xf32, #tpu.memory_space<smem>>
    %c0_1 = arith.constant 0 : index
    %c0_2 = arith.constant 0 : index
    %2 = vector.load %arg3[%c0_1, %c0_2] : memref<48x160xf32, #tpu.memory_space<vmem>>, vector<48x160xf32>
    %c0_3 = arith.constant 0 : index
    %c0_4 = arith.constant 0 : index
    %3 = vector.load %arg6[%c0_3, %c0_4] : memref<48x160xf32, #tpu.memory_space<vmem>>, vector<48x160xf32>
    %c0_5 = arith.constant 0 : index
    %c0_6 = arith.constant 0 : index
    %4 = vector.load %arg4[%c0_5, %c0_6] : memref<48x160xf32, #tpu.memory_space<vmem>>, vector<48x160xf32>
    %5 = vector.broadcast %0 : f32 to vector<48x160xf32>
    %6 = arith.subf %4, %5 : vector<48x160xf32>
    %c0_7 = arith.constant 0 : index
    %c0_8 = arith.constant 0 : index
    %7 = vector.load %arg5[%c0_7, %c0_8] : memref<48x160xf32, #tpu.memory_space<vmem>>, vector<48x160xf32>
    %8 = vector.broadcast %1 : f32 to vector<48x160xf32>
    %9 = arith.subf %7, %8 : vector<48x160xf32>
    %10 = arith.mulf %6, %6 : vector<48x160xf32>
    %11 = arith.addf %10, %3 : vector<48x160xf32>
    %12 = arith.mulf %9, %9 : vector<48x160xf32>
    %13 = arith.addf %12, %3 : vector<48x160xf32>
    %14 = arith.subf %11, %6 : vector<48x160xf32>
    %cst = arith.constant 5.000000e-01 : f32
    %15 = vector.broadcast %cst : f32 to vector<48x160xf32>
    %16 = arith.mulf %14, %15 : vector<48x160xf32>
    %cst_9 = arith.constant 1.000000e+00 : f32
    %17 = vector.broadcast %cst_9 : f32 to vector<48x160xf32>
    %18 = arith.subf %17, %11 : vector<48x160xf32>
    %19 = arith.addf %11, %6 : vector<48x160xf32>
    %cst_10 = arith.constant 5.000000e-01 : f32
    %20 = vector.broadcast %cst_10 : f32 to vector<48x160xf32>
    %21 = arith.mulf %19, %20 : vector<48x160xf32>
    %22 = arith.subf %13, %9 : vector<48x160xf32>
    %cst_11 = arith.constant 5.000000e-01 : f32
    %23 = vector.broadcast %cst_11 : f32 to vector<48x160xf32>
    %24 = arith.mulf %22, %23 : vector<48x160xf32>
    %cst_12 = arith.constant 1.000000e+00 : f32
    %25 = vector.broadcast %cst_12 : f32 to vector<48x160xf32>
    %26 = arith.subf %25, %13 : vector<48x160xf32>
    %27 = arith.addf %13, %9 : vector<48x160xf32>
    %cst_13 = arith.constant 5.000000e-01 : f32
    %28 = vector.broadcast %cst_13 : f32 to vector<48x160xf32>
    %29 = arith.mulf %27, %28 : vector<48x160xf32>
    %30 = arith.mulf %2, %21 : vector<48x160xf32>
    %31 = arith.mulf %2, %18 : vector<48x160xf32>
    %32 = arith.mulf %2, %16 : vector<48x160xf32>
    %33 = arith.mulf %30, %26 : vector<48x160xf32>
    %c0_14 = arith.constant 0 : index
    %c0_15 = arith.constant 0 : index
    %c0_16 = arith.constant 0 : index
    %34 = vector.load %arg7[%c0_14, %c0_15, %c0_16] : memref<9x48x160xf32, #tpu.memory_space<vmem>>, vector<1x48x160xf32>
    %35 = vector.shape_cast %34 : vector<1x48x160xf32> to vector<48x160xf32>
    %36 = vector.shape_cast %33 : vector<48x160xf32> to vector<1x48x160xf32>
    tpu.vector_store %arg7[%c0_14, %c0_15, %c0_16], %36 {strides = array<i32>} : memref<9x48x160xf32, #tpu.memory_space<vmem>>, vector<1x48x160xf32>,
    %37 = arith.mulf %31, %29 : vector<48x160xf32>
    %c1 = arith.constant 1 : index
    %c0_17 = arith.constant 0 : index
    %c0_18 = arith.constant 0 : index
    %38 = vector.load %arg7[%c1, %c0_17, %c0_18] : memref<9x48x160xf32, #tpu.memory_space<vmem>>, vector<1x48x160xf32>
    %39 = vector.shape_cast %38 : vector<1x48x160xf32> to vector<48x160xf32>
    %40 = vector.shape_cast %37 : vector<48x160xf32> to vector<1x48x160xf32>
    tpu.vector_store %arg7[%c1, %c0_17, %c0_18], %40 {strides = array<i32>} : memref<9x48x160xf32, #tpu.memory_space<vmem>>, vector<1x48x160xf32>,
    %41 = arith.mulf %32, %26 : vector<48x160xf32>
    %c2 = arith.constant 2 : index
    %c0_19 = arith.constant 0 : index
    %c0_20 = arith.constant 0 : index
    %42 = vector.load %arg7[%c2, %c0_19, %c0_20] : memref<9x48x160xf32, #tpu.memory_space<vmem>>, vector<1x48x160xf32>
    %43 = vector.shape_cast %42 : vector<1x48x160xf32> to vector<48x160xf32>
    %44 = vector.shape_cast %41 : vector<48x160xf32> to vector<1x48x160xf32>
    tpu.vector_store %arg7[%c2, %c0_19, %c0_20], %44 {strides = array<i32>} : memref<9x48x160xf32, #tpu.memory_space<vmem>>, vector<1x48x160xf32>,
    %45 = arith.mulf %31, %24 : vector<48x160xf32>
    %c3 = arith.constant 3 : index
    %c0_21 = arith.constant 0 : index
    %c0_22 = arith.constant 0 : index
    %46 = vector.load %arg7[%c3, %c0_21, %c0_22] : memref<9x48x160xf32, #tpu.memory_space<vmem>>, vector<1x48x160xf32>
    %47 = vector.shape_cast %46 : vector<1x48x160xf32> to vector<48x160xf32>
    %48 = vector.shape_cast %45 : vector<48x160xf32> to vector<1x48x160xf32>
    tpu.vector_store %arg7[%c3, %c0_21, %c0_22], %48 {strides = array<i32>} : memref<9x48x160xf32, #tpu.memory_space<vmem>>, vector<1x48x160xf32>,
    %49 = arith.mulf %30, %29 : vector<48x160xf32>
    %c4 = arith.constant 4 : index
    %c0_23 = arith.constant 0 : index
    %c0_24 = arith.constant 0 : index
    %50 = vector.load %arg7[%c4, %c0_23, %c0_24] : memref<9x48x160xf32, #tpu.memory_space<vmem>>, vector<1x48x160xf32>
    %51 = vector.shape_cast %50 : vector<1x48x160xf32> to vector<48x160xf32>
    %52 = vector.shape_cast %49 : vector<48x160xf32> to vector<1x48x160xf32>
    tpu.vector_store %arg7[%c4, %c0_23, %c0_24], %52 {strides = array<i32>} : memref<9x48x160xf32, #tpu.memory_space<vmem>>, vector<1x48x160xf32>,
    %53 = arith.mulf %32, %29 : vector<48x160xf32>
    %c5 = arith.constant 5 : index
    %c0_25 = arith.constant 0 : index
    %c0_26 = arith.constant 0 : index
    %54 = vector.load %arg7[%c5, %c0_25, %c0_26] : memref<9x48x160xf32, #tpu.memory_space<vmem>>, vector<1x48x160xf32>
    %55 = vector.shape_cast %54 : vector<1x48x160xf32> to vector<48x160xf32>
    %56 = vector.shape_cast %53 : vector<48x160xf32> to vector<1x48x160xf32>
    tpu.vector_store %arg7[%c5, %c0_25, %c0_26], %56 {strides = array<i32>} : memref<9x48x160xf32, #tpu.memory_space<vmem>>, vector<1x48x160xf32>,
    %57 = arith.mulf %32, %24 : vector<48x160xf32>
    %c6 = arith.constant 6 : index
    %c0_27 = arith.constant 0 : index
    %c0_28 = arith.constant 0 : index
    %58 = vector.load %arg7[%c6, %c0_27, %c0_28] : memref<9x48x160xf32, #tpu.memory_space<vmem>>, vector<1x48x160xf32>
    %59 = vector.shape_cast %58 : vector<1x48x160xf32> to vector<48x160xf32>
    %60 = vector.shape_cast %57 : vector<48x160xf32> to vector<1x48x160xf32>
    tpu.vector_store %arg7[%c6, %c0_27, %c0_28], %60 {strides = array<i32>} : memref<9x48x160xf32, #tpu.memory_space<vmem>>, vector<1x48x160xf32>,
    %61 = arith.mulf %30, %24 : vector<48x160xf32>
    %c7 = arith.constant 7 : index
    %c0_29 = arith.constant 0 : index
    %c0_30 = arith.constant 0 : index
    %62 = vector.load %arg7[%c7, %c0_29, %c0_30] : memref<9x48x160xf32, #tpu.memory_space<vmem>>, vector<1x48x160xf32>
    %63 = vector.shape_cast %62 : vector<1x48x160xf32> to vector<48x160xf32>
    %64 = vector.shape_cast %61 : vector<48x160xf32> to vector<1x48x160xf32>
    tpu.vector_store %arg7[%c7, %c0_29, %c0_30], %64 {strides = array<i32>} : memref<9x48x160xf32, #tpu.memory_space<vmem>>, vector<1x48x160xf32>,
    %65 = arith.mulf %31, %26 : vector<48x160xf32>
    %c8 = arith.constant 8 : index
    %c0_31 = arith.constant 0 : index
    %c0_32 = arith.constant 0 : index
    %66 = vector.load %arg7[%c8, %c0_31, %c0_32] : memref<9x48x160xf32, #tpu.memory_space<vmem>>, vector<1x48x160xf32>
    %67 = vector.shape_cast %66 : vector<1x48x160xf32> to vector<48x160xf32>
    %68 = vector.shape_cast %65 : vector<48x160xf32> to vector<1x48x160xf32>
    tpu.vector_store %arg7[%c8, %c0_31, %c0_32], %68 {strides = array<i32>} : memref<9x48x160xf32, #tpu.memory_space<vmem>>, vector<1x48x160xf32>,
    return
  }
  func.func @transform_0(%arg0: i32) -> i32 {
    %c0_i32 = arith.constant 0 : i32
    %c0_i32_0 = arith.constant 0 : i32
    return %c0_i32 : i32
  }
  func.func @transform_1(%arg0: i32) -> i32 {
    %c0_i32 = arith.constant 0 : i32
    %c0_i32_0 = arith.constant 0 : i32
    return %c0_i32 : i32
  }
  func.func @transform_2(%arg0: i32) -> (i32, i32) {
    %c0_i32 = arith.constant 0 : i32
    %c0_i32_0 = arith.constant 0 : i32
    return %arg0, %c0_i32 : i32, i32
  }
  func.func @transform_3(%arg0: i32) -> (i32, i32) {
    %c0_i32 = arith.constant 0 : i32
    %c0_i32_0 = arith.constant 0 : i32
    return %arg0, %c0_i32 : i32, i32
  }
  func.func @transform_4(%arg0: i32) -> (i32, i32) {
    %c0_i32 = arith.constant 0 : i32
    %c0_i32_0 = arith.constant 0 : i32
    return %arg0, %c0_i32 : i32, i32
  }
  func.func @transform_5(%arg0: i32) -> (i32, i32) {
    %c0_i32 = arith.constant 0 : i32
    %c0_i32_0 = arith.constant 0 : i32
    return %arg0, %c0_i32 : i32, i32
  }
  func.func @transform_6(%arg0: i32) -> (i32, i32, i32) {
    %c0_i32 = arith.constant 0 : i32
    %c0_i32_0 = arith.constant 0 : i32
    %c0_i32_1 = arith.constant 0 : i32
    return %c0_i32, %arg0, %c0_i32_0 : i32, i32, i32
  }
}

</mosaic_0001>

<bundles_post_ra>
// kernel: tpu_custom_call.1
= control target key start
LH: loop header
LB: loop body
LE: loop exit
PB: predicated region body
PF: predicated region fallthrough
CT: control target
= control target key end

     0   :  { %13 = vsyncpa [#allocation5], 0  ;;  %s1633_s0 = inlined_call_operand.<no memory space> [shape: f32[1], index: 0, kind: input, shape index: {}]   ;;  %s1634_s1 = inlined_call_operand.<no memory space> [shape: f32[1], index: 1, kind: input, shape index: {}]   ;;  %s1635_s2 = inlined_call_operand.hbm [shape: f32[48,160], index: 2, kind: input, shape index: {}]   ;;  %s1636_s3 = inlined_call_operand.hbm [shape: f32[48,160], index: 3, kind: input, shape index: {}]   ;;  %s1637_s4 = inlined_call_operand.hbm [shape: f32[48,160], index: 4, kind: input, shape index: {}]   ;;  %s1638_s5 = inlined_call_operand.hbm [shape: f32[48,160], index: 5, kind: input, shape index: {}]   ;;  %s1639_s6 = inlined_call_operand.hbm [shape: f32[9,48,160], index: 6, kind: output, shape index: {}]  }
   0x1   :  { %14 = vsyncpa [#allocation8], 0 }
   0x2   :  { %15 = vsyncpa [#allocation11], 0 }
   0x3   :  { %16 = vsyncpa [#allocation6], 0  ;;  %s730_s21 = smov [#allocation7]   ;;  %s731_s23 = smov [#allocation4]  }
   0x4   :  { %s38_s22 = sshll.u32 %s730_s21, 4  ;;  %s26_s24 = sshll.u32 %s731_s23, 4  ;;  %s39_s22 = int_to_ptr.vmem [resolvable:$true] %s38_s22  ;;  %s772_s24 = int_to_ptr.vmem [resolvable:$true] %s26_s24 }
   0x5   :  { %s612_s27 = scalar_lea.hbm %s1636_s3, 1536 }
   0x6   :  { %p613_p0 = scmp.ne.s32.totalorder %s1636_s3, %s612_s27  ;;  %p616_p1 = scmp.lt.u32.totalorder %s612_s27, %s1636_s3 }
   0x8   :  { %p618_p2 = pnand %p616_p1, %p613_p0 }
   0xa   :  { %621 = shalt.err (!%p618_p2)
}
   0xb   :  { %s622_s8 = scalar_lea.vmem %s39_s22, 1536  ;;  %p627_p4 = scmp.lt.s32.totalorder %s39_s22, %s39_s22 }
   0xc   :  { %p623_p3 = scmp.ne.s32.totalorder %s39_s22, %s622_s8  ;;  %p628_p5 = scmp.lt.s32.totalorder %s622_s8, %s622_s8 }
   0xe   :  { %p629_p6 = por %p628_p5, %p627_p4 }
  0x10   :  { %p630_p7 = pnand %p629_p6, %p623_p3 }
  0x12   :  { %633 = shalt.err (!%p630_p7)
}
  0x13   :  { %s732_s9 = smov 256   ;;  %s733_s10 = smov 16  }
  0x14   :  { %44 = dma.hbm_to_vmem [thread:$0]  %s1636_s3, 1536, %s39_s22, [#allocation8], %s732_s9, %s732_s9, %s733_s10  }
  0x15   :  { %s634_s15 = scalar_lea.hbm %s1635_s2, 1536 }
  0x16   :  { %p635_p8 = scmp.ne.s32.totalorder %s1635_s2, %s634_s15  ;;  %p638_p9 = scmp.lt.u32.totalorder %s634_s15, %s1635_s2 }
  0x18   :  { %p640_p10 = pnand %p638_p9, %p635_p8 }
  0x1a   :  { %643 = shalt.err (!%p640_p10)
}
  0x1b   :  { %s644_s20 = scalar_lea.vmem %s772_s24, 1536  ;;  %p649_p12 = scmp.lt.s32.totalorder %s772_s24, %s772_s24 }
  0x1c   :  { %p645_p11 = scmp.ne.s32.totalorder %s772_s24, %s644_s20  ;;  %p650_p13 = scmp.lt.s32.totalorder %s644_s20, %s644_s20 }
  0x1e   :  { %p651_p0 = por %p650_p13, %p649_p12 }
  0x20   :  { %p652_p1 = pnand %p651_p0, %p645_p11 }
  0x22   :  { %655 = shalt.err (!%p652_p1)
}
  0x23   :  { %32 = dma.hbm_to_vmem [thread:$0]  %s1635_s2, 1536, %s772_s24, [#allocation5], %s732_s9, %s732_s9, %s733_s10  }
  0x24   :  { %s734_s22 = smov [#allocation9]   ;;  %s735_s25 = smov [#allocation10]  }
  0x25   :  { %s50_s23 = sshll.u32 %s734_s22, 4  ;;  %s62_s26 = sshll.u32 %s735_s25, 4  ;;  %s51_s23 = int_to_ptr.vmem [resolvable:$true] %s50_s23  ;;  %s809_s26 = int_to_ptr.vmem [resolvable:$true] %s62_s26 }
  0x26   :  { %s656_s29 = scalar_lea.hbm %s1637_s4, 1536 }
  0x27   :  { %p657_p2 = scmp.ne.s32.totalorder %s1637_s4, %s656_s29  ;;  %p660_p3 = scmp.lt.u32.totalorder %s656_s29, %s1637_s4 }
  0x29   :  { %p662_p4 = pnand %p660_p3, %p657_p2 }
  0x2b   :  { %665 = shalt.err (!%p662_p4)
}
  0x2c   :  { %s666_s2 = scalar_lea.vmem %s51_s23, 1536  ;;  %p671_p6 = scmp.lt.s32.totalorder %s51_s23, %s51_s23 }
  0x2d   :  { %p667_p5 = scmp.ne.s32.totalorder %s51_s23, %s666_s2  ;;  %p672_p7 = scmp.lt.s32.totalorder %s666_s2, %s666_s2 }
  0x2f   :  { %p673_p8 = por %p672_p7, %p671_p6 }
  0x31   :  { %p674_p9 = pnand %p673_p8, %p667_p5 }
  0x33   :  { %677 = shalt.err (!%p674_p9)
}
  0x34   :  { %56 = dma.hbm_to_vmem [thread:$0]  %s1637_s4, 1536, %s51_s23, [#allocation8], %s732_s9, %s732_s9, %s733_s10  }
  0x35   :  { %s678_s15 = scalar_lea.hbm %s1638_s5, 1536 }
  0x36   :  { %p679_p10 = scmp.ne.s32.totalorder %s1638_s5, %s678_s15  ;;  %p682_p11 = scmp.lt.u32.totalorder %s678_s15, %s1638_s5 }
  0x38   :  { %p684_p12 = pnand %p682_p11, %p679_p10 }
  0x3a   :  { %687 = shalt.err (!%p684_p12)
}
  0x3b   :  { %s688_s20 = scalar_lea.vmem %s809_s26, 1536  ;;  %p693_p0 = scmp.lt.s32.totalorder %s809_s26, %s809_s26 }
  0x3c   :  { %p689_p13 = scmp.ne.s32.totalorder %s809_s26, %s688_s20  ;;  %p694_p1 = scmp.lt.s32.totalorder %s688_s20, %s688_s20 }
  0x3e   :  { %p695_p2 = por %p694_p1, %p693_p0 }
  0x40   :  { %p696_p3 = pnand %p695_p2, %p689_p13 }
  0x42   :  { %699 = shalt.err (!%p696_p3)
}
  0x43   :  { %68 = dma.hbm_to_vmem [thread:$0]  %s1638_s5, 1536, %s809_s26, [#allocation11], %s732_s9, %s732_s9, %s733_s10  }
  0x44   :  { %722 = dma.done.wait [#allocation5], 1536  }
  0x45   :  { %723 = vsyncadd [#allocation5], 4294965760 }
  0x46   :  { %724 = dma.done.wait [#allocation8], 3072  }
  0x47   :  { %725 = vsyncadd [#allocation8], 4294964224 }
  0x48   :  { %726 = dma.done.wait [#allocation11], 1536  }
  0x49   :  { %727 = vsyncadd [#allocation11], 4294965760  ;;  %v849_v0 = vstv %s1633_s0  ;;  %v854_v1 = vstv %s1634_s1  ;;  %v107_v2 = vld [vmem:[#allocation7] sm:$0xff]  ;;  %v108_v7 = vld [vmem:[#allocation7 + $0x8] sm:$0xff]  ;;  %vm374_vm0 = vcmask 261120   ;;  %s736_s0 = smov [#allocation12]  }
  0x4a   :  { %v857_v3 = vsub.f32 %v107_v2, %v849_v0  ;;  %v132_v4 = vld [vmem:[#allocation9] sm:$0xff]  ;;  %v133_v8 = vld [vmem:[#allocation9 + $0x8] sm:$0xff]  ;;  %v865_v10 = vsub.f32 %v108_v7, %v849_v0  ;;  %v109_v12 = vld [vmem:[#allocation7 + $0x10] sm:$0xff]  ;;  %s591_s1 = sshll.u32 %s736_s0, 4  ;;  %s592_s1 = int_to_ptr.vmem [resolvable:$true] %s591_s1 }
  0x4b   :  { %v95_v5 = vld [vmem:[#allocation10] sm:$0xff]  ;;  %v860_v6 = vsub.f32 %v132_v4, %v854_v1  ;;  %v868_v11 = vsub.f32 %v133_v8, %v854_v1  ;;  %v134_v13 = vld [vmem:[#allocation9 + $0x10] sm:$0xff]  ;;  %v96_v15 = vld [vmem:[#allocation10 + $0x8] sm:$0xff]  ;;  %v873_v16 = vsub.f32 %v109_v12, %v849_v0  ;;  %s700_s5 = scalar_lea.vmem %s592_s1, 13824  ;;  %p705_p5 = scmp.lt.s32.totalorder %s592_s1, %s592_s1 }
  0x4c   :  { %v157_v9 = vmul.f32 %v857_v3, %v857_v3  ;;  %1743 = vst [vmem:[#allocation18_spill] sm:$0xff] %v865_v10  ;;  %v876_v17 = vsub.f32 %v134_v13, %v854_v1  ;;  %v110_v18 = vld [vmem:[#allocation7 + $0x18] sm:$0xff]  ;;  %v158_v20 = vmul.f32 %v865_v10, %v865_v10  ;;  %v97_v22 = vld [vmem:[#allocation10 + $0x10] sm:$0xff]  ;;  %v111_v34 = vld [vmem:[#allocation7 + $0x20] sm:$0xff]  ;;  %p701_p4 = scmp.ne.s32.totalorder %s592_s1, %s700_s5  ;;  %p706_p6 = scmp.lt.s32.totalorder %s700_s5, %s700_s5 }
  0x4d   :  { %1742 = vst [vmem:[#allocation17_spill] sm:$0xff] %v860_v6  ;;  %v181_v14 = vmul.f32 %v860_v6, %v860_v6  ;;  %1744 = vst [vmem:[#allocation19_spill] sm:$0xff] %v873_v16  ;;  %v182_v21 = vmul.f32 %v868_v11, %v868_v11  ;;  %v885_v23 = vsub.f32 %v110_v18, %v849_v0  ;;  %v135_v24 = vld [vmem:[#allocation9 + $0x18] sm:$0xff]  ;;  %v904_v35 = vld [vmem:[#allocation4] sm:$0xff] }
  0x4e   :  { %v878_v19 = vadd.f32 %v157_v9, %v95_v5  ;;  %v159_v26 = vmul.f32 %v873_v16, %v873_v16  ;;  %v183_v27 = vmul.f32 %v876_v17, %v876_v17  ;;  %v98_v28 = vld [vmem:[#allocation10 + $0x18] sm:$0xff]  ;;  %v894_v29 = vsub.f32 %v135_v24, %v854_v1  ;;  %v136_v40 = vld [vmem:[#allocation9 + $0x20] sm:$0xff]  ;;  %v112_v45 = vld [vmem:[#allocation7 + $0x28] sm:$0xff]  ;;  %p707_p7 = por %p706_p6, %p705_p5 }
  0x4f   :  { %1745 = vst [vmem:[#allocation20_spill] sm:$0xff] %v885_v23  ;;  %v887_v25 = vadd.f32 %v181_v14, %v95_v5  ;;  %v898_v31 = vadd.f32 %v158_v20, %v96_v15  ;;  %v900_v32 = vadd.f32 %v182_v21, %v96_v15  ;;  %v160_v33 = vmul.f32 %v885_v23, %v885_v23  ;;  %v922_v46 = vld [vmem:[#allocation4 + $0x8] sm:$0xff]  ;;  %v937_v53 = vld [vmem:[#allocation4 + $0x10] sm:$0xff]  ;;  %v99_v55 = vld [vmem:[#allocation10 + $0x20] sm:$0xff] }
  0x50   :  { %v241_v30 = vadd.f32 %v878_v19, %v857_v3  ;;  %v909_v37 = vadd.f32 %v159_v26, %v97_v22  ;;  %v911_v38 = vadd.f32 %v183_v27, %v97_v22  ;;  %v184_v39 = vmul.f32 %v894_v29, %v894_v29  ;;  %v137_v57 = vld [vmem:[#allocation9 + $0x28] sm:$0xff]  ;;  %v944_v59 = vld [vmem:[#allocation4 + $0x18] sm:$0xff]  ;;  %v113_v63 = vld [vmem:[#allocation7 + $0x30] sm:$0xff]  ;;  %p708_p8 = pnand %p707_p7, %p701_p4 }
  0x51   :  { %1746 = vst [vmem:[#allocation21_spill] sm:$0xff] %v887_v25  ;;  %1747 = vst [vmem:[#allocation22_spill] sm:$0xff] %v900_v32  ;;  %v907_v36 = vsub.f32 1.0, %v887_v25  ;;  %v242_v42 = vadd.f32 %v898_v31, %v865_v10  ;;  %v918_v43 = vsub.f32 1.0, %v900_v32  ;;  %v920_v44 = vadd.f32 %v160_v33, %v98_v28  ;;  %v100_v8 = vld [vmem:[#allocation10 + $0x28] sm:$0xff]  ;;  %v138_v15 = vld [vmem:[#allocation9 + $0x30] sm:$0xff] }
  0x52   :  { %v253_v41 = vmul.f32 0.5, %v241_v30  ;;  %v243_v47 = vadd.f32 %v909_v37, %v873_v16  ;;  %v927_v48 = vsub.f32 1.0, %v911_v38  ;;  %v929_v49 = vadd.f32 %v184_v39, %v98_v28  ;;  %v114_v24 = vld [vmem:[#allocation7 + $0x38] sm:$0xff]  ;;  %v101_v33 = vld [vmem:[#allocation10 + $0x30] sm:$0xff]  ;;  %v115_v39 = vld [vmem:[#allocation7 + $0x40] sm:$0xff] }
  0x53   :  { %1748 = vst [vmem:[#allocation23_spill] sm:$0xff] %v907_v36  ;;  %1749 = vst [vmem:[#allocation24_spill] sm:$0xff] %v918_v43  ;;  %v932_v50 = vsub.f32 %v111_v34, %v849_v0  ;;  %v254_v52 = vmul.f32 0.5, %v242_v42  ;;  %v244_v54 = vadd.f32 %v920_v44, %v885_v23  ;;  %v942_v56 = vsub.f32 %v136_v40, %v854_v1  ;;  %v139_v34 = vld [vmem:[#allocation9 + $0x38] sm:$0xff] }
  0x54   :  { %1750 = vst [vmem:[#allocation25_spill] sm:$0xff] %v927_v48  ;;  %v935_v51 = vmul.f32 %v253_v41, %v904_v35  ;;  %v255_v58 = vmul.f32 0.5, %v243_v47  ;;  %v947_v60 = vsub.f32 1.0, %v929_v49  ;;  %v952_v62 = vsub.f32 %v112_v45, %v849_v0  ;;  %v992_v41 = vld [vmem:[#allocation4 + $0x20] sm:$0xff] }
  0x55   :  { %1751 = vst [vmem:[#allocation26_spill] sm:$0xff] %v932_v50  ;;  %v161_v61 = vmul.f32 %v932_v50, %v932_v50  ;;  %v957_v4 = vmul.f32 %v254_v52, %v922_v46  ;;  %v256_v5 = vmul.f32 0.5, %v244_v54  ;;  %v185_v7 = vmul.f32 %v942_v56, %v942_v56 }
  0x56   :  { %1752 = vst [vmem:[#allocation27_spill] sm:$0xff] %v935_v51  ;;  %1753 = vst [vmem:[#allocation28_spill] sm:$0xff] %v947_v60  ;;  %v361_v2 = vmul.f32 %v935_v51, %v907_v36  ;;  %v962_v9 = vmul.f32 %v255_v58, %v937_v53  ;;  %v967_v13 = vsub.f32 %v137_v57, %v854_v1  ;;  %v140_v58 = vld [vmem:[#allocation9 + $0x40] sm:$0xff]  ;;  %v117_v51 = vld [vmem:[#allocation7 + $0x50] sm:$0xff] }
  0x57   :  { %1754 = vst [vmem:[#allocation29_spill] sm:$0xff] %v952_v62  ;;  %1755 = vst [vmem:[#allocation30_spill] sm:$0xff] %v957_v4  ;;  %v964_v12 = vadd.f32 %v161_v61, %v99_v55  ;;  %v162_v14 = vmul.f32 %v952_v62, %v952_v62  ;;  %v362_v18 = vmul.f32 %v957_v4, %v918_v43  ;;  %v1010_v61 = vld [vmem:[#allocation4 + $0x28] sm:$0xff]  ;;  %v143_v36 = vld [vmem:[#allocation9 + $0x58] sm:$0xff] }
  0x58   :  { %1756 = vst [vmem:[#allocation31_spill] sm:$0xff] %v962_v9  ;;  %373 = vst [vmem:[#allocation12] sm:$0xff] %v361_v2  ;;  %v974_v20 = vmul.f32 %v256_v5, %v944_v59  ;;  %v976_v21 = vadd.f32 %v185_v7, %v99_v55  ;;  %v979_v22 = vsub.f32 %v113_v63, %v849_v0  ;;  %v102_v5 = vld [vmem:[#allocation10 + $0x38] sm:$0xff] }
  0x59   :  { %v363_v26 = vmul.f32 %v962_v9, %v927_v48  ;;  %v245_v27 = vadd.f32 %v964_v12, %v932_v50  ;;  %v985_v28 = vadd.f32 %v162_v14, %v100_v8  ;;  %v186_v30 = vmul.f32 %v967_v13, %v967_v13  ;;  %375 = vst.msk [vmem:[#allocation12 + $0x8] sm:$0xff] %vm374_vm0, %v362_v18 }
  0x5a   :  { %1757 = vst [vmem:[#allocation32_spill] sm:$0xff] %v974_v20  ;;  %1758 = vst [vmem:[#allocation33_spill] sm:$0xff] %v976_v21  ;;  %v364_v40 = vmul.f32 %v974_v20, %v947_v60  ;;  %v995_v42 = vsub.f32 1.0, %v976_v21  ;;  %v998_v45 = vsub.f32 %v138_v15, %v854_v1  ;;  %v163_v47 = vmul.f32 %v979_v22, %v979_v22  ;;  %v141_v20 = vld [vmem:[#allocation9 + $0x48] sm:$0xff]  ;;  %v142_v60 = vld [vmem:[#allocation9 + $0x50] sm:$0xff] }
  0x5b   :  { %1759 = vst [vmem:[#allocation34_spill] sm:$0xff] %v979_v22  ;;  %376 = vst [vmem:[#allocation12 + $0x10] sm:$0xff] %v363_v26  ;;  %v257_v52 = vmul.f32 0.5, %v245_v27  ;;  %v1002_v54 = vadd.f32 %v186_v30, %v100_v8  ;;  %v246_v55 = vadd.f32 %v985_v28, %v952_v62  ;;  %v1007_v57 = vsub.f32 %v114_v24, %v849_v0 }
  0x5c   :  { %1760 = vst [vmem:[#allocation35_spill] sm:$0xff] %v995_v42  ;;  %377 = vst.msk [vmem:[#allocation12 + $0x18] sm:$0xff] %vm374_vm0, %v364_v40  ;;  %v1012_v63 = vadd.f32 %v163_v47, %v101_v33  ;;  %v187_v2 = vmul.f32 %v998_v45, %v998_v45  ;;  %v1017_v7 = vsub.f32 %v139_v34, %v854_v1  ;;  %v103_v34 = vld [vmem:[#allocation10 + $0x40] sm:$0xff]  ;;  %v116_v40 = vld [vmem:[#allocation7 + $0x48] sm:$0xff] }
  0x5d   :  { %1761 = vst [vmem:[#allocation36_spill] sm:$0xff] %v1007_v57  ;;  %v1020_v8 = vsub.f32 %v115_v39, %v849_v0  ;;  %v1023_v14 = vmul.f32 %v257_v52, %v992_v41  ;;  %v258_v15 = vmul.f32 0.5, %v246_v55  ;;  %v1026_v18 = vsub.f32 1.0, %v1002_v54  ;;  %v1044_v55 = vld [vmem:[#allocation4 + $0x30] sm:$0xff] }
  0x5e   :  { %v164_v24 = vmul.f32 %v1007_v57, %v1007_v57  ;;  %v1030_v26 = vadd.f32 %v187_v2, %v101_v33  ;;  %v247_v27 = vadd.f32 %v1012_v63, %v979_v22  ;;  %v188_v30 = vmul.f32 %v1017_v7, %v1017_v7 }
  0x5f   :  { %1762 = vst [vmem:[#allocation37_spill] sm:$0xff] %v1020_v8  ;;  %1763 = vst [vmem:[#allocation38_spill] sm:$0xff] %v1023_v14  ;;  %v1037_v39 = vsub.f32 %v140_v58, %v854_v1  ;;  %v365_v47 = vmul.f32 %v1023_v14, %v995_v42  ;;  %v1042_v52 = vmul.f32 %v258_v15, %v1010_v61 }
  0x60   :  { %1764 = vst [vmem:[#allocation39_spill] sm:$0xff] %v1026_v18  ;;  %1765 = vst [vmem:[#allocation40_spill] sm:$0xff] %v1030_v26  ;;  %v1046_v33 = vadd.f32 %v164_v24, %v102_v5  ;;  %v165_v2 = vmul.f32 %v1020_v8, %v1020_v8  ;;  %v259_v9 = vmul.f32 0.5, %v247_v27  ;;  %v1051_v4 = vsub.f32 1.0, %v1030_v26 }
  0x61   :  { %1766 = vst [vmem:[#allocation41_spill] sm:$0xff] %v1042_v52  ;;  %v1053_v58 = vadd.f32 %v188_v30, %v102_v5  ;;  %v189_v14 = vmul.f32 %v1037_v39, %v1037_v39  ;;  %378 = vst [vmem:[#allocation12 + $0x20] sm:$0xff] %v365_v47  ;;  %v366_v15 = vmul.f32 %v1042_v52, %v1026_v18  ;;  %v1069_v30 = vld [vmem:[#allocation4 + $0x38] sm:$0xff]  ;;  %v104_v52 = vld [vmem:[#allocation10 + $0x48] sm:$0xff] }
  0x62   :  { %1767 = vst [vmem:[#allocation42_spill] sm:$0xff] %v1051_v4  ;;  %v248_v24 = vadd.f32 %v1046_v33, %v1007_v57  ;;  %v1061_v42 = vadd.f32 %v165_v2, %v103_v34  ;;  %v1064_v27 = vsub.f32 %v116_v40, %v849_v0  ;;  %v1067_v5 = vmul.f32 %v259_v9, %v1044_v55  ;;  %v118_v57 = vld [vmem:[#allocation7 + $0x58] sm:$0xff] }
  0x63   :  { %v1072_v48 = vsub.f32 1.0, %v1053_v58  ;;  %v1074_v47 = vadd.f32 %v189_v14, %v103_v34  ;;  %v1077_v18 = vsub.f32 %v141_v20, %v854_v1  ;;  %379 = vst.msk [vmem:[#allocation12 + $0x28] sm:$0xff] %vm374_vm0, %v366_v15  ;;  %v1085_v43 = vsub.f32 %v117_v51, %v849_v0  ;;  %v1089_v34 = vld [vmem:[#allocation4 + $0x40] sm:$0xff] }
  0x64   :  { %1768 = vst [vmem:[#allocation43_spill] sm:$0xff] %v1064_v27  ;;  %1769 = vst [vmem:[#allocation44_spill] sm:$0xff] %v1067_v5  ;;  %v260_v2 = vmul.f32 0.5, %v248_v24  ;;  %v249_v40 = vadd.f32 %v1061_v42, %v1020_v8  ;;  %v166_v9 = vmul.f32 %v1064_v27, %v1064_v27  ;;  %v367_v14 = vmul.f32 %v1067_v5, %v1051_v4  ;;  %v105_v24 = vld [vmem:[#allocation10 + $0x50] sm:$0xff] }
  0x65   :  { %1770 = vst [vmem:[#allocation45_spill] sm:$0xff] %v1072_v48  ;;  %1771 = vst [vmem:[#allocation46_spill] sm:$0xff] %v1074_v47  ;;  %v1092_v20 = vsub.f32 1.0, %v1074_v47  ;;  %v190_v15 = vmul.f32 %v1077_v18, %v1077_v18  ;;  %v1097_v8 = vsub.f32 %v142_v60, %v854_v1  ;;  %v167_v5 = vmul.f32 %v1085_v43, %v1085_v43 }
  0x66   :  { %1772 = vst [vmem:[#allocation47_spill] sm:$0xff] %v1085_v43  ;;  %v1100_v51 = vmul.f32 %v260_v2, %v1069_v30  ;;  %v261_v22 = vmul.f32 0.5, %v249_v40  ;;  %v1102_v62 = vadd.f32 %v166_v9, %v104_v52  ;;  %380 = vst [vmem:[#allocation12 + $0x30] sm:$0xff] %v367_v14  ;;  %v1111_v23 = vsub.f32 %v118_v57, %v849_v0  ;;  %v106_v14 = vld [vmem:[#allocation10 + $0x58] sm:$0xff] }
  0x67   :  { %1773 = vst [vmem:[#allocation48_spill] sm:$0xff] %v1092_v20  ;;  %v1106_v4 = vadd.f32 %v190_v15, %v104_v52  ;;  %v191_v50 = vmul.f32 %v1097_v8, %v1097_v8  ;;  %v1114_v60 = vsub.f32 %v143_v36, %v854_v1  ;;  %v1123_v52 = vadd.f32 %v167_v5, %v105_v24  ;;  %v1125_v15 = vld [vmem:[#allocation4 + $0x48] sm:$0xff] }
  0x68   :  { %1774 = vst [vmem:[#allocation49_spill] sm:$0xff] %v1100_v51  ;;  %1775 = vst [vmem:[#allocation50_spill] sm:$0xff] %v1111_v23  ;;  %v368_v2 = vmul.f32 %v1100_v51, %v1072_v48  ;;  %v1119_v40 = vmul.f32 %v261_v22, %v1089_v34  ;;  %v250_v9 = vadd.f32 %v1102_v62, %v1064_v27  ;;  %v229_v48 = vsub.f32 1.0, %v878_v19  ;;  %v1142_v27 = vld [vmem:[#allocation4 + $0x50] sm:$0xff] }
  0x69   :  { %v1128_v0 = vsub.f32 1.0, %v1106_v4  ;;  %v1130_v57 = vadd.f32 %v191_v50, %v105_v24  ;;  %v168_v1 = vmul.f32 %v1111_v23, %v1111_v23  ;;  %v192_v36 = vmul.f32 %v1114_v60, %v1114_v60 }
  0x6a   :  { %1776 = vst [vmem:[#allocation51_spill] sm:$0xff] %v1119_v40  ;;  %381 = vst.msk [vmem:[#allocation12 + $0x38] sm:$0xff] %vm374_vm0, %v368_v2  ;;  %v369_v22 = vmul.f32 %v1119_v40, %v1092_v20  ;;  %v262_v5 = vmul.f32 0.5, %v250_v9  ;;  %v251_v51 = vadd.f32 %v1123_v52, %v1085_v43  ;;  %v301_v2 = vadd.f32 %v887_v25, %v860_v6 }
  0x6b   :  { %1777 = vst [vmem:[#allocation52_spill] sm:$0xff] %v1128_v0  ;;  %v1145_v50 = vsub.f32 1.0, %v1130_v57  ;;  %v1147_v24 = vadd.f32 %v168_v1, %v106_v14  ;;  %v1149_v16 = vadd.f32 %v192_v36, %v106_v14  ;;  %v1157_v20 = vmul.f32 %v229_v48, %v904_v35  ;;  %v1174_v48 = vld [vmem:[#allocation4 + $0x58] sm:$0xff] }
  0x6c   :  { %382 = vst [vmem:[#allocation12 + $0x40] sm:$0xff] %v369_v22  ;;  %v1154_v9 = vmul.f32 %v262_v5, %v1125_v15  ;;  %v263_v40 = vmul.f32 0.5, %v251_v51  ;;  %v230_v43 = vsub.f32 1.0, %v898_v31  ;;  %v1165_v14 = vmul.f32 0.5, %v301_v2 }
  0x6d   :  { %1778 = vst [vmem:[#allocation53_spill] sm:$0xff] %v1145_v50  ;;  %1780 = vst [vmem:[#allocation55_spill] sm:$0xff] %v1157_v20  ;;  %v252_v10 = vadd.f32 %v1147_v24, %v1111_v23  ;;  %v1163_v1 = vsub.f32 1.0, %v1149_v16  ;;  %v302_v36 = vadd.f32 %v900_v32, %v868_v11  ;;  %v231_v25 = vsub.f32 1.0, %v909_v37 }
  0x6e   :  { %1779 = vst [vmem:[#allocation54_spill] sm:$0xff] %v1154_v9  ;;  %1782 = vst [vmem:[#allocation57_spill] sm:$0xff] %v1165_v14  ;;  %v370_v22 = vmul.f32 %v1154_v9, %v1128_v0  ;;  %v1172_v51 = vmul.f32 %v263_v40, %v1142_v27  ;;  %v1177_v5 = vmul.f32 %v230_v43, %v922_v46  ;;  %v232_v43 = vsub.f32 1.0, %v920_v44 }
  0x6f   :  { %1781 = vst [vmem:[#allocation56_spill] sm:$0xff] %v1163_v1  ;;  %v264_v6 = vmul.f32 0.5, %v252_v10  ;;  %v386_v2 = vmul.f32 %v1157_v20, %v1165_v14  ;;  %v1182_v23 = vmul.f32 0.5, %v302_v36  ;;  %v303_v32 = vadd.f32 %v911_v38, %v876_v17 }
  0x70   :  { %1783 = vst [vmem:[#allocation58_spill] sm:$0xff] %v1172_v51  ;;  %383 = vst.msk [vmem:[#allocation12 + $0x48] sm:$0xff] %vm374_vm0, %v370_v22  ;;  %v371_v40 = vmul.f32 %v1172_v51, %v1145_v50  ;;  %v1190_v9 = vmul.f32 %v231_v25, %v937_v53  ;;  %v304_v10 = vadd.f32 %v929_v49, %v894_v29  ;;  %v233_v22 = vsub.f32 1.0, %v964_v12 }
  0x71   :  { %1784 = vst [vmem:[#allocation59_spill] sm:$0xff] %v1182_v23  ;;  %v1196_v14 = vmul.f32 %v264_v6, %v1174_v48  ;;  %399 = vst [vmem:[#allocation12 + $0x60] sm:$0xff] %v386_v2  ;;  %v387_v36 = vmul.f32 %v1177_v5, %v1182_v23  ;;  %v1200_v20 = vmul.f32 0.5, %v303_v32  ;;  %v1206_v25 = vmul.f32 %v232_v43, %v944_v59 }
  0x72   :  { %1785 = vst [vmem:[#allocation60_spill] sm:$0xff] %v1190_v9  ;;  %384 = vst [vmem:[#allocation12 + $0x50] sm:$0xff] %v371_v40  ;;  %v1203_v51 = vmul.f32 0.5, %v304_v10  ;;  %v305_v50 = vadd.f32 %v976_v21, %v942_v56  ;;  %v234_v6 = vsub.f32 1.0, %v985_v28  ;;  %v1217_v40 = vmul.f32 %v233_v22, %v992_v41 }
  0x73   :  { %1786 = vst [vmem:[#allocation61_spill] sm:$0xff] %v1196_v14  ;;  %1787 = vst [vmem:[#allocation62_spill] sm:$0xff] %v1200_v20  ;;  %v372_v2 = vmul.f32 %v1196_v14, %v1163_v1  ;;  %v388_v32 = vmul.f32 %v1190_v9, %v1200_v20  ;;  %v306_v43 = vadd.f32 %v1002_v54, %v967_v13  ;;  %v235_v14 = vsub.f32 1.0, %v1012_v63 }
  0x74   :  { %1788 = vst [vmem:[#allocation63_spill] sm:$0xff] %v1203_v51  ;;  %1789 = vst [vmem:[#allocation64_spill] sm:$0xff] %v1206_v25  ;;  %v389_v10 = vmul.f32 %v1206_v25, %v1203_v51  ;;  %v1223_v23 = vmul.f32 0.5, %v305_v50  ;;  %v1226_v21 = vmul.f32 %v234_v6, %v1010_v61  ;;  %v307_v22 = vadd.f32 %v1030_v26, %v998_v45 }
  0x75   :  { %400 = vst.msk [vmem:[#allocation12 + $0x68] sm:$0xff] %vm374_vm0, %v387_v36  ;;  %1790 = vst [vmem:[#allocation65_spill] sm:$0xff] %v1217_v40  ;;  %v1230_v36 = vmul.f32 0.5, %v306_v43  ;;  %v236_v20 = vsub.f32 1.0, %v1046_v33  ;;  %v308_v51 = vadd.f32 %v1053_v58, %v1017_v7  ;;  %v1241_v6 = vmul.f32 %v235_v14, %v1044_v55 }
  0x76   :  { %1791 = vst [vmem:[#allocation66_spill] sm:$0xff] %v1223_v23  ;;  %1792 = vst [vmem:[#allocation67_spill] sm:$0xff] %v1226_v21  ;;  %v390_v50 = vmul.f32 %v1217_v40, %v1223_v23  ;;  %v1248_v25 = vmul.f32 0.5, %v307_v22  ;;  %v238_v40 = vsub.f32 1.0, %v1102_v62  ;;  %v239_v22 = vsub.f32 1.0, %v1123_v52 }
  0x77   :  { %385 = vst.msk [vmem:[#allocation12 + $0x58] sm:$0xff] %vm374_vm0, %v372_v2  ;;  %401 = vst [vmem:[#allocation12 + $0x70] sm:$0xff] %v388_v32  ;;  %v237_v2 = vsub.f32 1.0, %v1061_v42  ;;  %v309_v32 = vadd.f32 %v1074_v47, %v1037_v39  ;;  %v391_v43 = vmul.f32 %v1226_v21, %v1230_v36  ;;  %v1250_v26 = vmul.f32 0.5, %v308_v51 }
  0x78   :  { %1793 = vst [vmem:[#allocation68_spill] sm:$0xff] %v1230_v36  ;;  %402 = vst.msk [vmem:[#allocation12 + $0x78] sm:$0xff] %vm374_vm0, %v389_v10  ;;  %v1253_v10 = vmul.f32 %v236_v20, %v1069_v30  ;;  %v310_v47 = vadd.f32 %v1106_v4, %v1077_v18  ;;  %v392_v51 = vmul.f32 %v1241_v6, %v1248_v25 }
  0x79   :  { %1794 = vst [vmem:[#allocation69_spill] sm:$0xff] %v1241_v6  ;;  %1795 = vst [vmem:[#allocation70_spill] sm:$0xff] %v1248_v25  ;;  %v1255_v23 = vmul.f32 0.5, %v309_v32  ;;  %v1258_v14 = vmul.f32 %v237_v2, %v1089_v34  ;;  %v1276_v36 = vmul.f32 %v238_v40, %v1125_v15 }
  0x7a   :  { %1796 = vst [vmem:[#allocation71_spill] sm:$0xff] %v1250_v26  ;;  %1797 = vst [vmem:[#allocation72_spill] sm:$0xff] %v1253_v10  ;;  %v393_v20 = vmul.f32 %v1253_v10, %v1250_v26  ;;  %v1273_v32 = vmul.f32 0.5, %v310_v47  ;;  %v1283_v26 = vmul.f32 %v239_v22, %v1142_v27  ;;  %v312_v10 = vadd.f32 %v1149_v16, %v1114_v60 }
  0x7b   :  { %403 = vst [vmem:[#allocation12 + $0x80] sm:$0xff] %v390_v50  ;;  %1798 = vst [vmem:[#allocation73_spill] sm:$0xff] %v1255_v23  ;;  %v311_v50 = vadd.f32 %v1130_v57, %v1097_v8  ;;  %v394_v2 = vmul.f32 %v1258_v14, %v1255_v23  ;;  %v205_v47 = vsub.f32 %v878_v19, %v857_v3  ;;  %v1806_v3 = vld [vmem:[#allocation20_spill] sm:$0xff] }
  0x7c   :  { %1799 = vst [vmem:[#allocation74_spill] sm:$0xff] %v1258_v14  ;;  %404 = vst.msk [vmem:[#allocation12 + $0x88] sm:$0xff] %vm374_vm0, %v391_v43  ;;  %v240_v43 = vsub.f32 1.0, %v1147_v24  ;;  %v395_v40 = vmul.f32 %v1276_v36, %v1273_v32  ;;  %v1300_v6 = vmul.f32 0.5, %v312_v10  ;;  %v208_v19 = vsub.f32 %v920_v44, %v1806_v3  ;;  %v1812_v3 = vld [vmem:[#allocation24_spill] sm:$0xff] }
  0x7d   :  { %1800 = vst [vmem:[#allocation75_spill] sm:$0xff] %v1273_v32  ;;  %1801 = vst [vmem:[#allocation76_spill] sm:$0xff] %v1276_v36  ;;  %v1280_v25 = vmul.f32 0.5, %v311_v50  ;;  %v1805_v50 = vld [vmem:[#allocation19_spill] sm:$0xff]  ;;  %v217_v21 = vmul.f32 0.5, %v205_v47  ;;  %v1807_v32 = vld [vmem:[#allocation26_spill] sm:$0xff] }
  0x7e   :  { %405 = vst [vmem:[#allocation12 + $0x90] sm:$0xff] %v392_v51  ;;  %406 = vst.msk [vmem:[#allocation12 + $0x98] sm:$0xff] %vm374_vm0, %v393_v20  ;;  %v1292_v23 = vmul.f32 %v240_v43, %v1174_v48  ;;  %v1804_v51 = vld [vmem:[#allocation18_spill] sm:$0xff]  ;;  %v207_v22 = vsub.f32 %v909_v37, %v1805_v50  ;;  %v209_v36 = vsub.f32 %v964_v12, %v1807_v32  ;;  %v220_v47 = vmul.f32 0.5, %v208_v19  ;;  %v1813_v19 = vld [vmem:[#allocation25_spill] sm:$0xff] }
  0x7f   :  { %1802 = vst [vmem:[#allocation77_spill] sm:$0xff] %v1283_v26  ;;  %407 = vst [vmem:[#allocation12 + $0xa0] sm:$0xff] %v394_v2  ;;  %v206_v20 = vsub.f32 %v898_v31, %v1804_v51  ;;  %v396_v14 = vmul.f32 %v1283_v26, %v1280_v25  ;;  %v1808_v31 = vld [vmem:[#allocation29_spill] sm:$0xff]  ;;  %v1312_v10 = vmul.f32 %v217_v21, %v904_v35  ;;  %v1809_v50 = vld [vmem:[#allocation34_spill] sm:$0xff] }
  0x80   :  { %1803 = vst [vmem:[#allocation78_spill] sm:$0xff] %v1292_v23  ;;  %408 = vst.msk [vmem:[#allocation12 + $0xa8] sm:$0xff] %vm374_vm0, %v395_v40  ;;  %v219_v43 = vmul.f32 0.5, %v207_v22  ;;  %v210_v51 = vsub.f32 %v985_v28, %v1808_v31  ;;  %v397_v37 = vmul.f32 %v1292_v23, %v1300_v6  ;;  %v211_v44 = vsub.f32 %v1012_v63, %v1809_v50  ;;  %v1810_v28 = vld [vmem:[#allocation23_spill] sm:$0xff]  ;;  %v1811_v22 = vld [vmem:[#allocation36_spill] sm:$0xff] }
  0x81   :  { %v218_v2 = vmul.f32 0.5, %v206_v20  ;;  %409 = vst [vmem:[#allocation12 + $0xb0] sm:$0xff] %v396_v14  ;;  %v221_v12 = vmul.f32 0.5, %v209_v36  ;;  %v411_v14 = vmul.f32 %v1312_v10, %v1810_v28  ;;  %v1326_v35 = vmul.f32 %v220_v47, %v944_v59  ;;  %v1816_v47 = vld [vmem:[#allocation35_spill] sm:$0xff] }
  0x82   :  { %v1320_v20 = vmul.f32 %v219_v43, %v937_v53  ;;  %v222_v32 = vmul.f32 0.5, %v210_v51  ;;  %410 = vst.msk [vmem:[#allocation12 + $0xb8] sm:$0xff] %vm374_vm0, %v397_v37  ;;  %v223_v21 = vmul.f32 0.5, %v211_v44  ;;  %v212_v63 = vsub.f32 %v1046_v33, %v1811_v22  ;;  %v1814_v43 = vld [vmem:[#allocation28_spill] sm:$0xff]  ;;  %v1815_v51 = vld [vmem:[#allocation37_spill] sm:$0xff]  ;;  %v1817_v50 = vld [vmem:[#allocation39_spill] sm:$0xff] }
  0x83   :  { %v1317_v40 = vmul.f32 %v218_v2, %v922_v46  ;;  %v1335_v36 = vmul.f32 %v221_v12, %v992_v41  ;;  %424 = vst [vmem:[#allocation12 + $0xc0] sm:$0xff] %v411_v14  ;;  %v414_v59 = vmul.f32 %v1326_v35, %v1814_v43  ;;  %v213_v37 = vsub.f32 %v1061_v42, %v1815_v51  ;;  %v1818_v44 = vld [vmem:[#allocation43_spill] sm:$0xff]  ;;  %v1820_v14 = vld [vmem:[#allocation42_spill] sm:$0xff]  ;;  %v1822_v51 = vld [vmem:[#allocation17_spill] sm:$0xff] }
  0x84   :  { %v413_v53 = vmul.f32 %v1320_v20, %v1813_v19  ;;  %v1338_v2 = vmul.f32 %v222_v32, %v1010_v61  ;;  %v1343_v31 = vmul.f32 %v223_v21, %v1044_v55  ;;  %v224_v33 = vmul.f32 0.5, %v212_v63  ;;  %v1819_v32 = vld [vmem:[#allocation47_spill] sm:$0xff]  ;;  %v1821_v63 = vld [vmem:[#allocation50_spill] sm:$0xff] }
  0x85   :  { %v412_v46 = vmul.f32 %v1317_v40, %v1812_v3  ;;  %v415_v41 = vmul.f32 %v1335_v36, %v1816_v47  ;;  %v214_v12 = vsub.f32 %v1102_v62, %v1818_v44  ;;  %v215_v55 = vsub.f32 %v1123_v52, %v1819_v32  ;;  %427 = vst.msk [vmem:[#allocation12 + $0xd8] sm:$0xff] %vm374_vm0, %v414_v59  ;;  %v1823_v44 = vld [vmem:[#allocation21_spill] sm:$0xff]  ;;  %v1824_v59 = vld [vmem:[#allocation22_spill] sm:$0xff] }
  0x86   :  { %426 = vst [vmem:[#allocation12 + $0xd0] sm:$0xff] %v413_v53  ;;  %v416_v61 = vmul.f32 %v1338_v2, %v1817_v50  ;;  %v417_v42 = vmul.f32 %v1343_v31, %v1820_v14  ;;  %v1360_v21 = vmul.f32 %v224_v33, %v1069_v30  ;;  %v225_v22 = vmul.f32 0.5, %v213_v37  ;;  %v1825_v14 = vld [vmem:[#allocation45_spill] sm:$0xff] }
  0x87   :  { %425 = vst.msk [vmem:[#allocation12 + $0xc8] sm:$0xff] %vm374_vm0, %v412_v46  ;;  %v216_v46 = vsub.f32 %v1147_v24, %v1821_v63  ;;  %428 = vst [vmem:[#allocation12 + $0xe0] sm:$0xff] %v415_v41  ;;  %v226_v53 = vmul.f32 0.5, %v214_v12  ;;  %v227_v62 = vmul.f32 0.5, %v215_v55  ;;  %v265_v52 = vsub.f32 %v1823_v44, %v1822_v51  ;;  %v1826_v55 = vld [vmem:[#allocation48_spill] sm:$0xff]  ;;  %v1828_v63 = vld [vmem:[#allocation55_spill] sm:$0xff] }
  0x88   :  { %429 = vst.msk [vmem:[#allocation12 + $0xe8] sm:$0xff] %vm374_vm0, %v416_v61  ;;  %v266_v32 = vsub.f32 %v1824_v59, %v868_v11  ;;  %430 = vst [vmem:[#allocation12 + $0xf0] sm:$0xff] %v417_v42  ;;  %v418_v30 = vmul.f32 %v1360_v21, %v1825_v14  ;;  %v1372_v33 = vmul.f32 %v225_v22, %v1089_v34 }
  0x89   :  { %v228_v37 = vmul.f32 0.5, %v216_v46  ;;  %v267_v24 = vsub.f32 %v911_v38, %v876_v17  ;;  %v1377_v41 = vmul.f32 %v226_v53, %v1125_v15  ;;  %v1380_v61 = vmul.f32 %v227_v62, %v1142_v27  ;;  %v1827_v27 = vld [vmem:[#allocation53_spill] sm:$0xff] }
  0x8a   :  { %v1382_v12 = vmul.f32 0.5, %v265_v52  ;;  %v1384_v11 = vmul.f32 0.5, %v266_v32  ;;  %431 = vst.msk [vmem:[#allocation12 + $0xf8] sm:$0xff] %vm374_vm0, %v418_v30  ;;  %v419_v34 = vmul.f32 %v1372_v33, %v1826_v55  ;;  %v268_v17 = vsub.f32 %v929_v49, %v894_v29  ;;  %v1829_v49 = vld [vmem:[#allocation33_spill] sm:$0xff]  ;;  %v1830_v52 = vld [vmem:[#allocation40_spill] sm:$0xff]  ;;  %v1831_v30 = vld [vmem:[#allocation46_spill] sm:$0xff] }
  0x8b   :  { %v1390_v42 = vmul.f32 %v228_v37, %v1174_v48  ;;  %v1392_v22 = vmul.f32 0.5, %v267_v24  ;;  %v420_v38 = vmul.f32 %v1377_v41, %v1128_v0  ;;  %v421_v15 = vmul.f32 %v1380_v61, %v1827_v27  ;;  %v1845_v27 = vld [vmem:[#allocation63_spill] sm:$0xff]  ;;  %v1848_v0 = vld [vmem:[#allocation38_spill] sm:$0xff] }
  0x8c   :  { %v436_v46 = vmul.f32 %v1828_v63, %v1382_v12  ;;  %v437_v53 = vmul.f32 %v1177_v5, %v1384_v11  ;;  %432 = vst [vmem:[#allocation12 + $0x100] sm:$0xff] %v419_v34  ;;  %v1408_v29 = vmul.f32 0.5, %v268_v17  ;;  %v269_v51 = vsub.f32 %v1829_v49, %v942_v56  ;;  %v1832_v56 = vld [vmem:[#allocation64_spill] sm:$0xff]  ;;  %v1833_v17 = vld [vmem:[#allocation65_spill] sm:$0xff]  ;;  %v1837_v49 = vld [vmem:[#allocation74_spill] sm:$0xff] }
  0x8d   :  { %v422_v48 = vmul.f32 %v1390_v42, %v1163_v1  ;;  %v438_v62 = vmul.f32 %v1190_v9, %v1392_v22  ;;  %433 = vst.msk [vmem:[#allocation12 + $0x108] sm:$0xff] %vm374_vm0, %v420_v38  ;;  %434 = vst [vmem:[#allocation12 + $0x110] sm:$0xff] %v421_v15  ;;  %v270_v44 = vsub.f32 %v1002_v54, %v967_v13  ;;  %v1851_v55 = vld [vmem:[#allocation70_spill] sm:$0xff]  ;;  %v1860_v9 = vld [vmem:[#allocation61_spill] sm:$0xff] }
  0x8e   :  { %449 = vst [vmem:[#allocation12 + $0x120] sm:$0xff] %v436_v46  ;;  %450 = vst.msk [vmem:[#allocation12 + $0x128] sm:$0xff] %vm374_vm0, %v437_v53  ;;  %v271_v59 = vsub.f32 %v1830_v52, %v998_v45  ;;  %v272_v32 = vsub.f32 %v1053_v58, %v1017_v7  ;;  %v273_v37 = vsub.f32 %v1831_v30, %v1037_v39  ;;  %v1425_v34 = vmul.f32 0.5, %v269_v51 }
  0x8f   :  { %435 = vst.msk [vmem:[#allocation12 + $0x118] sm:$0xff] %vm374_vm0, %v422_v48  ;;  %451 = vst [vmem:[#allocation12 + $0x130] sm:$0xff] %v438_v62  ;;  %v439_v24 = vmul.f32 %v1832_v56, %v1408_v29  ;;  %v274_v13 = vsub.f32 %v1106_v4, %v1077_v18  ;;  %v275_v45 = vsub.f32 %v1130_v57, %v1097_v8  ;;  %v1431_v54 = vmul.f32 0.5, %v270_v44  ;;  %v1834_v8 = vld [vmem:[#allocation67_spill] sm:$0xff]  ;;  %v1835_v57 = vld [vmem:[#allocation69_spill] sm:$0xff] }
  0x90   :  { %v1433_v7 = vmul.f32 0.5, %v271_v59  ;;  %v1435_v58 = vmul.f32 0.5, %v272_v32  ;;  %v1437_v39 = vmul.f32 0.5, %v273_v37  ;;  %v440_v38 = vmul.f32 %v1833_v17, %v1425_v34  ;;  %v1836_v48 = vld [vmem:[#allocation72_spill] sm:$0xff]  ;;  %v1840_v32 = vld [vmem:[#allocation27_spill] sm:$0xff]  ;;  %v1859_v56 = vld [vmem:[#allocation58_spill] sm:$0xff] }
  0x91   :  { %452 = vst.msk [vmem:[#allocation12 + $0x138] sm:$0xff] %vm374_vm0, %v439_v24  ;;  %v1442_v15 = vmul.f32 0.5, %v274_v13  ;;  %v1444_v46 = vmul.f32 0.5, %v275_v45  ;;  %v276_v4 = vsub.f32 %v1149_v16, %v1114_v60  ;;  %v441_v18 = vmul.f32 %v1834_v8, %v1431_v54  ;;  %v1838_v44 = vld [vmem:[#allocation76_spill] sm:$0xff]  ;;  %v1839_v60 = vld [vmem:[#allocation57_spill] sm:$0xff]  ;;  %v1841_v37 = vld [vmem:[#allocation59_spill] sm:$0xff] }
  0x92   :  { %v442_v53 = vmul.f32 %v1835_v57, %v1433_v7  ;;  %v443_v62 = vmul.f32 %v1836_v48, %v1435_v58  ;;  %v444_v51 = vmul.f32 %v1837_v49, %v1437_v39  ;;  %453 = vst [vmem:[#allocation12 + $0x140] sm:$0xff] %v440_v38  ;;  %v461_v30 = vmul.f32 %v1840_v32, %v1839_v60  ;;  %v1842_v24 = vld [vmem:[#allocation30_spill] sm:$0xff]  ;;  %v1844_v38 = vld [vmem:[#allocation31_spill] sm:$0xff]  ;;  %v1852_v48 = vld [vmem:[#allocation44_spill] sm:$0xff] }
  0x93   :  { %v445_v52 = vmul.f32 %v1838_v44, %v1442_v15  ;;  %v446_v59 = vmul.f32 %v1283_v26, %v1444_v46  ;;  %v1460_v16 = vmul.f32 0.5, %v276_v4  ;;  %454 = vst.msk [vmem:[#allocation12 + $0x148] sm:$0xff] %vm374_vm0, %v441_v18  ;;  %v462_v13 = vmul.f32 %v1842_v24, %v1841_v37  ;;  %v1843_v45 = vld [vmem:[#allocation62_spill] sm:$0xff]  ;;  %v1846_v44 = vld [vmem:[#allocation32_spill] sm:$0xff]  ;;  %v1853_v57 = vld [vmem:[#allocation71_spill] sm:$0xff] }
  0x94   :  { %455 = vst [vmem:[#allocation12 + $0x150] sm:$0xff] %v442_v53  ;;  %456 = vst.msk [vmem:[#allocation12 + $0x158] sm:$0xff] %vm374_vm0, %v443_v62  ;;  %v463_v1 = vmul.f32 %v1844_v38, %v1843_v45  ;;  %v464_v26 = vmul.f32 %v1846_v44, %v1845_v27  ;;  %v1847_v4 = vld [vmem:[#allocation66_spill] sm:$0xff]  ;;  %v1849_v53 = vld [vmem:[#allocation68_spill] sm:$0xff]  ;;  %v467_v14 = vmul.f32 %v1852_v48, %v1851_v55 }
  0x95   :  { %457 = vst [vmem:[#allocation12 + $0x160] sm:$0xff] %v444_v51  ;;  %v465_v49 = vmul.f32 %v1848_v0, %v1847_v4  ;;  %458 = vst.msk [vmem:[#allocation12 + $0x168] sm:$0xff] %vm374_vm0, %v445_v52  ;;  %v447_v18 = vmul.f32 %v1292_v23, %v1460_v16  ;;  %v1850_v62 = vld [vmem:[#allocation41_spill] sm:$0xff]  ;;  %v1857_v23 = vld [vmem:[#allocation75_spill] sm:$0xff]  ;;  %v471_v43 = vmul.f32 %v1859_v56, %v1280_v25 }
  0x96   :  { %459 = vst [vmem:[#allocation12 + $0x170] sm:$0xff] %v446_v59  ;;  %474 = vst [vmem:[#allocation12 + $0x180] sm:$0xff] %v461_v30  ;;  %v466_v51 = vmul.f32 %v1850_v62, %v1849_v53  ;;  %v1854_v8 = vld [vmem:[#allocation49_spill] sm:$0xff]  ;;  %v1856_v59 = vld [vmem:[#allocation51_spill] sm:$0xff]  ;;  %v472_v19 = vmul.f32 %v1860_v9, %v1300_v6 }
  0x97   :  { %v468_v50 = vmul.f32 %v1854_v8, %v1853_v57  ;;  %475 = vst.msk [vmem:[#allocation12 + $0x188] sm:$0xff] %vm374_vm0, %v462_v13  ;;  %476 = vst [vmem:[#allocation12 + $0x190] sm:$0xff] %v463_v1  ;;  %v1855_v52 = vld [vmem:[#allocation73_spill] sm:$0xff]  ;;  %v1858_v30 = vld [vmem:[#allocation54_spill] sm:$0xff]  ;;  %v487_v1 = vmul.f32 %v1317_v40, %v1841_v37  ;;  %v489_v13 = vmul.f32 %v1326_v35, %v1845_v27 }
  0x98   :  { %477 = vst.msk [vmem:[#allocation12 + $0x198] sm:$0xff] %vm374_vm0, %v464_v26  ;;  %478 = vst [vmem:[#allocation12 + $0x1a0] sm:$0xff] %v465_v49  ;;  %v469_v17 = vmul.f32 %v1856_v59, %v1855_v52  ;;  %v470_v47 = vmul.f32 %v1858_v30, %v1857_v23  ;;  %v486_v26 = vmul.f32 %v1312_v10, %v1839_v60 }
  0x99   :  { %460 = vst.msk [vmem:[#allocation12 + $0x178] sm:$0xff] %vm374_vm0, %v447_v18  ;;  %479 = vst.msk [vmem:[#allocation12 + $0x1a8] sm:$0xff] %vm374_vm0, %v466_v51  ;;  %v488_v49 = vmul.f32 %v1320_v20, %v1843_v45  ;;  %v492_v60 = vmul.f32 %v1343_v31, %v1851_v55  ;;  %v493_v37 = vmul.f32 %v1360_v21, %v1853_v57  ;;  %v1865_v57 = vld [vmem:[#allocation35_spill] sm:$0xff]  ;;  %v1872_v45 = vld [vmem:[#allocation72_spill] sm:$0xff] }
  0x9a   :  { %480 = vst [vmem:[#allocation12 + $0x1b0] sm:$0xff] %v467_v14  ;;  %481 = vst.msk [vmem:[#allocation12 + $0x1b8] sm:$0xff] %vm374_vm0, %v468_v50  ;;  %v490_v50 = vmul.f32 %v1335_v36, %v1847_v4  ;;  %v491_v14 = vmul.f32 %v1338_v2, %v1849_v53  ;;  %v497_v55 = vmul.f32 %v1390_v42, %v1300_v6  ;;  %v1873_v4 = vld [vmem:[#allocation48_spill] sm:$0xff]  ;;  %v1874_v18 = vld [vmem:[#allocation74_spill] sm:$0xff] }
  0x9b   :  { %482 = vst [vmem:[#allocation12 + $0x1c0] sm:$0xff] %v469_v17  ;;  %483 = vst.msk [vmem:[#allocation12 + $0x1c8] sm:$0xff] %vm374_vm0, %v470_v47  ;;  %v496_v47 = vmul.f32 %v1380_v61, %v1280_v25  ;;  %v511_v27 = vmul.f32 %v1312_v10, %v1382_v12  ;;  %v512_v17 = vmul.f32 %v1317_v40, %v1384_v11  ;;  %v1876_v51 = vld [vmem:[#allocation76_spill] sm:$0xff] }
  0x9c   :  { %484 = vst [vmem:[#allocation12 + $0x1d0] sm:$0xff] %v471_v43  ;;  %485 = vst.msk [vmem:[#allocation12 + $0x1d8] sm:$0xff] %vm374_vm0, %v472_v19  ;;  %v494_v19 = vmul.f32 %v1372_v33, %v1855_v52  ;;  %v495_v43 = vmul.f32 %v1377_v41, %v1857_v23  ;;  %v513_v23 = vmul.f32 %v1320_v20, %v1392_v22 }
  0x9d   :  { %499 = vst [vmem:[#allocation12 + $0x1e0] sm:$0xff] %v486_v26  ;;  %500 = vst.msk [vmem:[#allocation12 + $0x1e8] sm:$0xff] %vm374_vm0, %v487_v1  ;;  %v514_v25 = vmul.f32 %v1326_v35, %v1408_v29  ;;  %v515_v6 = vmul.f32 %v1335_v36, %v1425_v34  ;;  %v516_v10 = vmul.f32 %v1338_v2, %v1431_v54  ;;  %v1879_v1 = vld [vmem:[#allocation56_spill] sm:$0xff] }
  0x9e   :  { %501 = vst [vmem:[#allocation12 + $0x1f0] sm:$0xff] %v488_v49  ;;  %502 = vst.msk [vmem:[#allocation12 + $0x1f8] sm:$0xff] %vm374_vm0, %v489_v13  ;;  %v517_v40 = vmul.f32 %v1343_v31, %v1433_v7  ;;  %v518_v20 = vmul.f32 %v1360_v21, %v1435_v58  ;;  %v519_v35 = vmul.f32 %v1372_v33, %v1437_v39  ;;  %v1880_v49 = vld [vmem:[#allocation78_spill] sm:$0xff] }
  0x9f   :  { %503 = vst [vmem:[#allocation12 + $0x200] sm:$0xff] %v490_v50  ;;  %504 = vst.msk [vmem:[#allocation12 + $0x208] sm:$0xff] %vm374_vm0, %v491_v14  ;;  %v520_v36 = vmul.f32 %v1377_v41, %v1442_v15  ;;  %v521_v2 = vmul.f32 %v1380_v61, %v1444_v46  ;;  %v522_v31 = vmul.f32 %v1390_v42, %v1460_v16 }
  0xa0   :  { %505 = vst [vmem:[#allocation12 + $0x210] sm:$0xff] %v492_v60  ;;  %506 = vst.msk [vmem:[#allocation12 + $0x218] sm:$0xff] %vm374_vm0, %v493_v37  ;;  %v536_v21 = vmul.f32 %v1840_v32, %v1382_v12  ;;  %v537_v33 = vmul.f32 %v1842_v24, %v1384_v11  ;;  %v538_v41 = vmul.f32 %v1844_v38, %v1392_v22  ;;  %v1869_v32 = vld [vmem:[#allocation42_spill] sm:$0xff]  ;;  %v1871_v24 = vld [vmem:[#allocation45_spill] sm:$0xff] }
  0xa1   :  { %507 = vst [vmem:[#allocation12 + $0x220] sm:$0xff] %v494_v19  ;;  %508 = vst.msk [vmem:[#allocation12 + $0x228] sm:$0xff] %vm374_vm0, %v495_v43  ;;  %v539_v61 = vmul.f32 %v1846_v44, %v1408_v29  ;;  %v540_v42 = vmul.f32 %v1848_v0, %v1425_v34  ;;  %v541_v12 = vmul.f32 %v1850_v62, %v1431_v54  ;;  %v1875_v62 = vld [vmem:[#allocation52_spill] sm:$0xff] }
  0xa2   :  { %509 = vst [vmem:[#allocation12 + $0x230] sm:$0xff] %v496_v47  ;;  %510 = vst.msk [vmem:[#allocation12 + $0x238] sm:$0xff] %vm374_vm0, %v497_v55  ;;  %v542_v11 = vmul.f32 %v1852_v48, %v1433_v7  ;;  %v543_v22 = vmul.f32 %v1854_v8, %v1435_v58  ;;  %v544_v29 = vmul.f32 %v1856_v59, %v1437_v39  ;;  %v1861_v39 = vld [vmem:[#allocation25_spill] sm:$0xff]  ;;  %v1864_v8 = vld [vmem:[#allocation64_spill] sm:$0xff] }
  0xa3   :  { %524 = vst [vmem:[#allocation12 + $0x240] sm:$0xff] %v511_v27  ;;  %525 = vst.msk [vmem:[#allocation12 + $0x248] sm:$0xff] %vm374_vm0, %v512_v17  ;;  %v545_v0 = vmul.f32 %v1858_v30, %v1442_v15  ;;  %v546_v34 = vmul.f32 %v1859_v56, %v1444_v46  ;;  %v547_v54 = vmul.f32 %v1860_v9, %v1460_v16  ;;  %v1862_v15 = vld [vmem:[#allocation60_spill] sm:$0xff]  ;;  %v1866_v48 = vld [vmem:[#allocation65_spill] sm:$0xff] }
  0xa4   :  { %526 = vst [vmem:[#allocation12 + $0x250] sm:$0xff] %v513_v23  ;;  %527 = vst.msk [vmem:[#allocation12 + $0x258] sm:$0xff] %vm374_vm0, %v514_v25  ;;  %v561_v7 = vmul.f32 %v1828_v63, %v1810_v28  ;;  %v562_v58 = vmul.f32 %v1177_v5, %v1812_v3  ;;  %v563_v56 = vmul.f32 %v1862_v15, %v1861_v39  ;;  %v1863_v46 = vld [vmem:[#allocation28_spill] sm:$0xff]  ;;  %v1867_v16 = vld [vmem:[#allocation39_spill] sm:$0xff] }
  0xa5   :  { %528 = vst [vmem:[#allocation12 + $0x260] sm:$0xff] %v515_v6  ;;  %529 = vst.msk [vmem:[#allocation12 + $0x268] sm:$0xff] %vm374_vm0, %v516_v10  ;;  %v564_v9 = vmul.f32 %v1864_v8, %v1863_v46  ;;  %v565_v44 = vmul.f32 %v1866_v48, %v1865_v57  ;;  %v1868_v28 = vld [vmem:[#allocation67_spill] sm:$0xff]  ;;  %v1870_v5 = vld [vmem:[#allocation69_spill] sm:$0xff]  ;;  %v568_v38 = vmul.f32 %v1872_v45, %v1871_v24 }
  0xa6   :  { %530 = vst [vmem:[#allocation12 + $0x270] sm:$0xff] %v517_v40  ;;  %531 = vst.msk [vmem:[#allocation12 + $0x278] sm:$0xff] %vm374_vm0, %v518_v20  ;;  %v566_v63 = vmul.f32 %v1868_v28, %v1867_v16  ;;  %v567_v3 = vmul.f32 %v1870_v5, %v1869_v32  ;;  %v569_v53 = vmul.f32 %v1874_v18, %v1873_v4  ;;  %v1877_v59 = vld [vmem:[#allocation53_spill] sm:$0xff] }
  0xa7   :  { %532 = vst [vmem:[#allocation12 + $0x280] sm:$0xff] %v519_v35  ;;  %533 = vst.msk [vmem:[#allocation12 + $0x288] sm:$0xff] %vm374_vm0, %v520_v36  ;;  %v570_v52 = vmul.f32 %v1876_v51, %v1875_v62  ;;  %v1878_v30 = vld [vmem:[#allocation77_spill] sm:$0xff]  ;;  %v572_v13 = vmul.f32 %v1880_v49, %v1879_v1 }
  0xa8   :  { %534 = vst [vmem:[#allocation12 + $0x290] sm:$0xff] %v521_v2  ;;  %535 = vst.msk [vmem:[#allocation12 + $0x298] sm:$0xff] %vm374_vm0, %v522_v31  ;;  %v571_v26 = vmul.f32 %v1878_v30, %v1877_v59 }
  0xa9   :  { %549 = vst [vmem:[#allocation12 + $0x2a0] sm:$0xff] %v536_v21  ;;  %550 = vst.msk [vmem:[#allocation12 + $0x2a8] sm:$0xff] %vm374_vm0, %v537_v33 }
  0xaa   :  { %551 = vst [vmem:[#allocation12 + $0x2b0] sm:$0xff] %v538_v41  ;;  %552 = vst.msk [vmem:[#allocation12 + $0x2b8] sm:$0xff] %vm374_vm0, %v539_v61 }
  0xab   :  { %553 = vst [vmem:[#allocation12 + $0x2c0] sm:$0xff] %v540_v42  ;;  %554 = vst.msk [vmem:[#allocation12 + $0x2c8] sm:$0xff] %vm374_vm0, %v541_v12 }
  0xac   :  { %555 = vst [vmem:[#allocation12 + $0x2d0] sm:$0xff] %v542_v11  ;;  %556 = vst.msk [vmem:[#allocation12 + $0x2d8] sm:$0xff] %vm374_vm0, %v543_v22 }
  0xad   :  { %557 = vst [vmem:[#allocation12 + $0x2e0] sm:$0xff] %v544_v29  ;;  %558 = vst.msk [vmem:[#allocation12 + $0x2e8] sm:$0xff] %vm374_vm0, %v545_v0 }
  0xae   :  { %559 = vst [vmem:[#allocation12 + $0x2f0] sm:$0xff] %v546_v34  ;;  %560 = vst.msk [vmem:[#allocation12 + $0x2f8] sm:$0xff] %vm374_vm0, %v547_v54 }
  0xaf   :  { %574 = vst [vmem:[#allocation12 + $0x300] sm:$0xff] %v561_v7  ;;  %575 = vst.msk [vmem:[#allocation12 + $0x308] sm:$0xff] %vm374_vm0, %v562_v58 }
  0xb0   :  { %576 = vst [vmem:[#allocation12 + $0x310] sm:$0xff] %v563_v56  ;;  %577 = vst.msk [vmem:[#allocation12 + $0x318] sm:$0xff] %vm374_vm0, %v564_v9 }
  0xb1   :  { %578 = vst [vmem:[#allocation12 + $0x320] sm:$0xff] %v565_v44  ;;  %579 = vst.msk [vmem:[#allocation12 + $0x328] sm:$0xff] %vm374_vm0, %v566_v63 }
  0xb2   :  { %580 = vst [vmem:[#allocation12 + $0x330] sm:$0xff] %v567_v3  ;;  %581 = vst.msk [vmem:[#allocation12 + $0x338] sm:$0xff] %vm374_vm0, %v568_v38 }
  0xb3   :  { %582 = vst [vmem:[#allocation12 + $0x340] sm:$0xff] %v569_v53  ;;  %583 = vst.msk [vmem:[#allocation12 + $0x348] sm:$0xff] %vm374_vm0, %v570_v52 }
  0xb4   :  { %584 = vst [vmem:[#allocation12 + $0x350] sm:$0xff] %v571_v26  ;;  %585 = vst.msk [vmem:[#allocation12 + $0x358] sm:$0xff] %vm374_vm0, %v572_v13 }
  0xb5   :  { %711 = shalt.err (!%p708_p8)
}
  0xb6   :  { %s712_s28 = scalar_lea.hbm %s1639_s6, 13824 }
  0xb7   :  { %p713_p9 = scmp.ne.s32.totalorder %s1639_s6, %s712_s28  ;;  %p716_p10 = scmp.lt.u32.totalorder %s712_s28, %s1639_s6 }
  0xb9   :  { %p718_p11 = pnand %p716_p10, %p713_p9 }
  0xbb   :  { %721 = shalt.err (!%p718_p11)
}
  0xbc   :  { %597 = dma.vmem_to_hbm [thread:$0]  %s592_s1, 13824, %s1639_s6, [#allocation6], %s732_s9, %s732_s9, %s733_s10  }
  0xbd   :  { %728 = dma.done.wait [#allocation6], 13824  }
  0xbe   :  { %729 = vsyncadd [#allocation6], 4294953472 }
  0xbf   :  { %601 = vsyncpa [#allocation5], 1 }
  0xc0   :  { %602 = vsyncpa [#allocation8], 1 }
  0xc1   :  { %603 = vsyncpa [#allocation11], 1 }
  0xc2   :  { %604 = vsyncpa [#allocation6], 1 }

</bundles_post_ra>
